<compile_context>
chip_gen: v7x
topology: tpu7x:2x2x1
jax: 0.10.0
libtpu: 0.0.40
codegen_flags: <defaults>
</compile_context>

<pallas_src>
import jax
import jax.numpy as jnp
from jax.experimental import pallas as pl
from jax.experimental.pallas import tpu as pltpu


def _round_up(x, m):
    return ((x + m - 1) // m) * m


def _vmem_bytes(shape, dtype, buffers=2):
    """Rough per-operand VMEM footprint, rounded up to hardware tiles."""
    itemsize = jnp.dtype(dtype).itemsize
    r = shape[-2] if len(shape) >= 2 else 1
    c = shape[-1]
    sub = 8 * max(1, 4 // itemsize)            # f32 tile: (8,128); bf16: (16,128)
    return buffers * _round_up(r, sub) * _round_up(c, 128) * itemsize


def prepare_code_to_dirichlet_params(w1, b1, w2, b2, bn_gamma, bn_beta,
                                     bn_mean, bn_var, *, eps=1e-5,
                                     mxu_dtype=jnp.bfloat16):
    """One-time (model-load) preprocessing, hoisted out of the per-call path.

    Folds eval-mode BatchNorm1d into fc2:
        scale  = gamma / sqrt(running_var + eps)
        w2'    = w2 * scale            (per output column, folded in f32)
        shift' = b2 * scale + beta - running_mean * scale
    so the kernel epilogue is simply exp(h1 @ w2' + shift').
    Linear weights are stored (in, out), i.e. transposed vs PyTorch (out, in).
    """
    scale = bn_gamma * jax.lax.rsqrt(bn_var + eps)                 # (T,)
    shift = bn_beta - bn_mean * scale                              # (T,)
    w2_folded = (w2.astype(jnp.float32) * scale[None, :]).astype(mxu_dtype)
    shift_row = (b2.astype(jnp.float32) * scale + shift).reshape(1, -1)
    return (w1.astype(mxu_dtype),
            b1.astype(jnp.float32).reshape(1, -1),
            w2_folded,
            shift_row.astype(jnp.float32))


def code_to_dirichlet_kernel(x_ref, w1_ref, b1_ref, w2_ref, shift_ref,
                             alpha_ref):
    # fc1: cast x to bf16 on the VPU (VALU has huge slack), MXU matmul with
    # f32 accumulation, then softplus in f32 (EUP exp + log1p).
    x = x_ref[...].astype(w1_ref.dtype)
    h1 = jnp.dot(x, w1_ref[...], preferred_element_type=jnp.float32)
    h1 = jnp.logaddexp(h1 + b1_ref[...], 0.0)          # == F.softplus(beta=1)

    # fc2 with the BatchNorm scale pre-folded into the weights, then the
    # folded bias/shift and exp -> Dirichlet concentrations.
    y = jnp.dot(h1.astype(w2_ref.dtype), w2_ref[...],
                preferred_element_type=jnp.float32)
    alpha_ref[...] = jnp.exp(y + shift_ref[...]).astype(alpha_ref.dtype)


def code_to_dirichlet(x, w1p, b1p, w2p, shiftp, *, block_batch=512,
                      min_grid_steps=2, out_dtype=jnp.float32):
    """x: (B, C) f32 (unpadded, uncast).  w1p/b1p/w2p/shiftp come from
    prepare_code_to_dirichlet_params().  Returns alphas: (B, T)."""
    B, C = x.shape
    H = w1p.shape[1]
    T = w2p.shape[1]
    SUB = 8

    # Batch tiling: >= min_grid_steps grid steps (so the "parallel" axis
    # shards across v7x's two TensorCores), sublane-aligned tiles, and at most
    # nsteps*8 - 1 rows of padding (cdiv-style split, no rounding B up to a
    # full block_batch multiple).
    nsteps = max(min_grid_steps, pl.cdiv(B, block_batch))
    TB = _round_up(pl.cdiv(B, nsteps), SUB)
    Bp = TB * nsteps
    xp = jnp.pad(x, ((0, Bp - B), (0, 0))) if Bp > B else x

    mxu_dtype = w1p.dtype

    # Tight VMEM request (+~50% headroom) instead of a blanket 16-48 MiB ask:
    # double-buffered streaming x/out tiles, resident weights, f32 temporaries.
    footprint = (_vmem_bytes((TB, C), x.dtype)                 # x tile (x2)
                 + _vmem_bytes((TB, T), out_dtype)             # out tile (x2)
                 + _vmem_bytes((C, H), mxu_dtype)              # w1
                 + _vmem_bytes((1, H), jnp.float32)            # b1
                 + _vmem_bytes((H, T), mxu_dtype)              # w2 (BN folded)
                 + _vmem_bytes((1, T), jnp.float32)            # folded shift
                 + _vmem_bytes((TB, H), jnp.float32, 1)        # h1 temporary
                 + _vmem_bytes((TB, T), jnp.float32, 1))       # y temporary
    vmem_limit = int(min(footprint * 3 // 2 + (4 << 20), 64 << 20))

    cost = pl.CostEstimate(
        flops=2 * Bp * C * H + 2 * Bp * H * T,
        transcendentals=2 * Bp * H + Bp * T,   # softplus (exp+log1p) + final exp
        bytes_accessed=(xp.size * xp.dtype.itemsize
                        + w1p.size * w1p.dtype.itemsize
                        + w2p.size * w2p.dtype.itemsize
                        + (b1p.size + shiftp.size) * 4
                        + Bp * T * jnp.dtype(out_dtype).itemsize),
    )

    # Note: constant-index operands (w1/b1/w2/shift) could additionally use
    # pipeline_mode=pl.Buffered(1) as minor VMEM/DMA hygiene.
    alphas = pl.pallas_call(
        code_to_dirichlet_kernel,
        out_shape=jax.ShapeDtypeStruct((Bp, T), out_dtype),
        grid_spec=pltpu.PrefetchScalarGridSpec(
            num_scalar_prefetch=0,
            grid=(nsteps,),
            in_specs=[
                pl.BlockSpec((TB, C), lambda i: (i, 0)),   # x: streamed per tile
                pl.BlockSpec((C, H), lambda i: (0, 0)),    # w1: VMEM-resident
                pl.BlockSpec((1, H), lambda i: (0, 0)),    # b1
                pl.BlockSpec((H, T), lambda i: (0, 0)),    # w2 (BN folded)
                pl.BlockSpec((1, T), lambda i: (0, 0)),    # folded shift
            ],
            out_specs=pl.BlockSpec((TB, T), lambda i: (i, 0)),
        ),
        compiler_params=pltpu.CompilerParams(
            dimension_semantics=("parallel",),   # shards across v7x's two TCs
            vmem_limit_bytes=vmem_limit,
        ),
        cost_estimate=cost,
    )(xp, w1p, b1p, w2p, shiftp)

    return alphas[:B] if Bp > B else alphas
    # TODO(synk): for very large code_size, add a trailing reduction grid axis
    # over C with an f32 accumulator + pl.when init/finalize.


def reference(x, w1, b1, w2, b2, bn_gamma, bn_beta, bn_mean, bn_var, eps=1e-5):
    h1 = jax.nn.softplus(x @ w1 + b1)
    y = h1 @ w2 + b2
    y = (y - bn_mean) / jnp.sqrt(bn_var + eps) * bn_gamma + bn_beta
    return jnp.exp(y)


if __name__ == "__main__":
    # Small shapes consistent with the module: latent code -> topics.
    batch, code_size, hidden_size, num_topics = 32, 48, 64, 20

    key = jax.random.PRNGKey(0)
    ks = jax.random.split(key, 9)

    x = jax.random.normal(ks[0], (batch, code_size), dtype=jnp.float32)
    lim1 = 1.0 / (code_size ** 0.5)
    lim2 = 1.0 / (hidden_size ** 0.5)
    w1 = jax.random.uniform(ks[1], (code_size, hidden_size), jnp.float32, -lim1, lim1)
    b1 = jax.random.uniform(ks[2], (hidden_size,), jnp.float32, -lim1, lim1)
    w2 = jax.random.uniform(ks[3], (hidden_size, num_topics), jnp.float32, -lim2, lim2)
    b2 = jax.random.uniform(ks[4], (num_topics,), jnp.float32, -lim2, lim2)
    bn_gamma = 1.0 + 0.1 * jax.random.normal(ks[5], (num_topics,), jnp.float32)
    bn_beta = 0.1 * jax.random.normal(ks[6], (num_topics,), jnp.float32)
    bn_mean = 0.1 * jax.random.normal(ks[7], (num_topics,), jnp.float32)
    bn_var = jax.random.uniform(ks[8], (num_topics,), jnp.float32, 0.5, 1.5)

    # One-time weight preprocessing (BN fold + bf16 casts), hoisted out of the
    # per-call hot path.
    params = prepare_code_to_dirichlet_params(
        w1, b1, w2, b2, bn_gamma, bn_beta, bn_mean, bn_var)
    params = jax.block_until_ready(params)

    # block_batch=8 at this toy batch so the grid has 4 steps and the batch
    # pipeline (double-buffered x/out tiles) is actually exercised.
    alphas = code_to_dirichlet(x, *params, block_batch=8)
    alphas = jax.block_until_ready(alphas)

    ref = reference(x, w1, b1, w2, b2, bn_gamma, bn_beta, bn_mean, bn_var)
    assert alphas.shape == (batch, num_topics)
    assert bool(jnp.all(alphas > 0)), "Dirichlet concentrations must be positive"
    # bf16 MXU operands vs pure-f32 reference -> a few % tolerance.
    assert jnp.allclose(alphas, ref, rtol=5e-2, atol=5e-2), "mismatch vs reference"

    print("KERNEL_OK")
</pallas_src>

<mosaic_0001>
module attributes {stable_mosaic.version = 11 : i64} {
  func.func @code_to_dirichlet_kernel(%arg0: i32, %arg1: memref<8x48xf32, #tpu.memory_space<vmem>>, %arg2: memref<48x64xbf16, #tpu.memory_space<vmem>>, %arg3: memref<1x64xf32, #tpu.memory_space<vmem>>, %arg4: memref<64x20xbf16, #tpu.memory_space<vmem>>, %arg5: memref<1x20xf32, #tpu.memory_space<vmem>>, %arg6: memref<8x20xf32, #tpu.memory_space<vmem>>) attributes {dimension_semantics = [#tpu.dimension_semantics<parallel>], iteration_bounds = array<i64: 4>, scalar_prefetch = 0 : i64, scratch_operands = 0 : i64, tpu.core_type = #tpu.core_type<tc>, window_params = [{transform_indices = @transform_0, window_bounds = array<i64: 8, 48>}, {pipeline_mode = #tpu.pipeline_mode<synchronous>, transform_indices = @transform_1, window_bounds = array<i64: 48, 64>}, {pipeline_mode = #tpu.pipeline_mode<synchronous>, transform_indices = @transform_2, window_bounds = array<i64: 1, 64>}, {pipeline_mode = #tpu.pipeline_mode<synchronous>, transform_indices = @transform_3, window_bounds = array<i64: 64, 20>}, {pipeline_mode = #tpu.pipeline_mode<synchronous>, transform_indices = @transform_4, window_bounds = array<i64: 1, 20>}, {transform_indices = @transform_5, window_bounds = array<i64: 8, 20>}]} {
    %c0 = arith.constant 0 : index
    %c0_0 = arith.constant 0 : index
    %0 = vector.load %arg1[%c0, %c0_0] : memref<8x48xf32, #tpu.memory_space<vmem>>, vector<8x48xf32>
    %1 = arith.truncf %0 : vector<8x48xf32> to vector<8x48xbf16>
    %c0_1 = arith.constant 0 : index
    %c0_2 = arith.constant 0 : index
    %2 = vector.load %arg2[%c0_1, %c0_2] : memref<48x64xbf16, #tpu.memory_space<vmem>>, vector<48x64xbf16>
    %cst = arith.constant dense<0.000000e+00> : vector<8x64xf32>
    %3 = tpu.matmul %1, %2, %cst {dimension_numbers = #tpu.dot_dimension_numbers<[1], [0], [0], [1], [0, 0, 1, 1], [], []>} : vector<8x48xbf16>, vector<48x64xbf16>, vector<8x64xf32> -> vector<8x64xf32>
    %c0_3 = arith.constant 0 : index
    %c0_4 = arith.constant 0 : index
    %4 = vector.load %arg3[%c0_3, %c0_4] : memref<1x64xf32, #tpu.memory_space<vmem>>, vector<1x64xf32>
    %5 = vector.broadcast %4 : vector<1x64xf32> to vector<8x64xf32>
    %6 = arith.addf %3, %5 : vector<8x64xf32>
    %cst_5 = arith.constant 0.000000e+00 : f32
    %7 = vector.broadcast %cst_5 : f32 to vector<8x64xf32>
    %8 = arith.maximumf %6, %7 : vector<8x64xf32>
    %9 = vector.broadcast %cst_5 : f32 to vector<8x64xf32>
    %10 = arith.subf %6, %9 : vector<8x64xf32>
    %11 = arith.cmpf one, %10, %10 : vector<8x64xf32>
    %12 = vector.broadcast %cst_5 : f32 to vector<8x64xf32>
    %13 = arith.addf %6, %12 : vector<8x64xf32>
    %14 = math.absf %10 : vector<8x64xf32>
    %cst_6 = arith.constant 0.000000e+00 : f32
    %15 = vector.broadcast %cst_6 : f32 to vector<8x64xf32>
    %16 = arith.subf %15, %14 : vector<8x64xf32>
    %17 = math.exp %16 : vector<8x64xf32>
    %18 = math.log1p %17 : vector<8x64xf32>
    %19 = arith.addf %8, %18 : vector<8x64xf32>
    %20 = arith.select %11, %13, %19 : vector<8x64xi1>, vector<8x64xf32>
    %21 = arith.truncf %20 : vector<8x64xf32> to vector<8x64xbf16>
    %c0_7 = arith.constant 0 : index
    %c0_8 = arith.constant 0 : index
    %22 = vector.load %arg4[%c0_7, %c0_8] : memref<64x20xbf16, #tpu.memory_space<vmem>>, vector<64x20xbf16>
    %cst_9 = arith.constant dense<0.000000e+00> : vector<8x20xf32>
    %23 = tpu.matmul %21, %22, %cst_9 {dimension_numbers = #tpu.dot_dimension_numbers<[1], [0], [0], [1], [0, 0, 1, 1], [], []>} : vector<8x64xbf16>, vector<64x20xbf16>, vector<8x20xf32> -> vector<8x20xf32>
    %c0_10 = arith.constant 0 : index
    %c0_11 = arith.constant 0 : index
    %24 = vector.load %arg5[%c0_10, %c0_11] : memref<1x20xf32, #tpu.memory_space<vmem>>, vector<1x20xf32>
    %25 = vector.broadcast %24 : vector<1x20xf32> to vector<8x20xf32>
    %26 = arith.addf %23, %25 : vector<8x20xf32>
    %27 = math.exp %26 : vector<8x20xf32>
    %c0_12 = arith.constant 0 : index
    %c0_13 = arith.constant 0 : index
    %28 = vector.load %arg6[%c0_12, %c0_13] : memref<8x20xf32, #tpu.memory_space<vmem>>, vector<8x20xf32>
    tpu.vector_store %arg6[%c0_12, %c0_13], %27 {strides = array<i32>} : memref<8x20xf32, #tpu.memory_space<vmem>>, vector<8x20xf32>,
    return
  }
  func.func @transform_0(%arg0: i32) -> (i32, i32) {
    %c0_i32 = arith.constant 0 : i32
    %c0_i32_0 = arith.constant 0 : i32
    return %arg0, %c0_i32 : i32, i32
  }
  func.func @transform_1(%arg0: i32) -> (i32, i32) {
    %c0_i32 = arith.constant 0 : i32
    %c0_i32_0 = arith.constant 0 : i32
    %c0_i32_1 = arith.constant 0 : i32
    return %c0_i32, %c0_i32_0 : i32, i32
  }
  func.func @transform_2(%arg0: i32) -> (i32, i32) {
    %c0_i32 = arith.constant 0 : i32
    %c0_i32_0 = arith.constant 0 : i32
    %c0_i32_1 = arith.constant 0 : i32
    return %c0_i32, %c0_i32_0 : i32, i32
  }
  func.func @transform_3(%arg0: i32) -> (i32, i32) {
    %c0_i32 = arith.constant 0 : i32
    %c0_i32_0 = arith.constant 0 : i32
    %c0_i32_1 = arith.constant 0 : i32
    return %c0_i32, %c0_i32_0 : i32, i32
  }
  func.func @transform_4(%arg0: i32) -> (i32, i32) {
    %c0_i32 = arith.constant 0 : i32
    %c0_i32_0 = arith.constant 0 : i32
    %c0_i32_1 = arith.constant 0 : i32
    return %c0_i32, %c0_i32_0 : i32, i32
  }
  func.func @transform_5(%arg0: i32) -> (i32, i32) {
    %c0_i32 = arith.constant 0 : i32
    %c0_i32_0 = arith.constant 0 : i32
    return %arg0, %c0_i32 : i32, i32
  }
}

</mosaic_0001>

<bundles_post_ra>
// kernel: tpu_custom_call.1
= control target key start
LH: loop header
LB: loop body
LE: loop exit
PB: predicated region body
PF: predicated region fallthrough
CT: control target
= control target key end

     0   :  { %10 = vsyncpa [#allocation3], 0  ;;  %s648_s18 = smov 0   ;;  %s729_s0 = inlined_call_operand.vmem [shape: f32[32,48], index: 0, kind: input, shape index: {}]   ;;  %s730_s1 = inlined_call_operand.hbm [shape: bf16[48,64], index: 1, kind: input, shape index: {}]   ;;  %s731_s2 = inlined_call_operand.vmem [shape: f32[1,64], index: 2, kind: input, shape index: {}]   ;;  %s732_s3 = inlined_call_operand.vmem [shape: bf16[64,20], index: 3, kind: input, shape index: {}]   ;;  %s733_s4 = inlined_call_operand.vmem [shape: f32[1,20], index: 4, kind: input, shape index: {}]   ;;  %s734_s5 = inlined_call_operand.vmem [shape: f32[32,20], index: 5, kind: output, shape index: {}]  }
   0x1 LB: > { %s654_s19 = sadd.s32 4294967295, %s611_s18   ;;  %p486_p0 = scmp.ge.s32.totalorder %s611_s18, 1  ;;  %s611_s18 = sphi %s648_s18, %s16_s18  }
   0x2   : > { %p157_p1 = scmp.lt.s32.totalorder %s611_s18, 5  ;;  %s613_s20 = smov [#allocation2]  }
   0x3   : > { %s169_s21 = sshll.u32 %s613_s20, 4  ;;  %p735_p3 = scmp.eq.s32.totalorder %s654_s19, 0  ;;  %s170_s21 = int_to_ptr.vmem [resolvable:$true] %s169_s21 }
   0x4   : > { %p658_p2 = pnand %p486_p0, %p157_p1  ;;  %s573_s26 = scalar_lea.hbm %s730_s1, 384 }
   0x5   : > { %p574_p6 = scmp.ne.s32.totalorder %s730_s1, %s573_s26  ;;  %p580_p10 = scmp.lt.u32.totalorder %s573_s26, %s730_s1 }
   0x6   : > { %s737_s22 = scalar_select %p658_p2, 1, 0 }
   0x7   : > { %p541_p4 = pneg %p658_p2 }
   0x9   : > { %p667_p5 = pnand %p735_p3, %p541_p4 }
   0xb   : > { %p575_p7 = pneg %p667_p5 }
   0xd   : > { %p576_p8 = pnand %p575_p7, %p574_p6 }
   0xf   : > { %p577_p9 = pneg %p576_p8 }
  0x11   : > { %p582_p11 = pnand %p580_p10, %p577_p9 }
  0x13   : > { %585 = shalt.err (!%p582_p11)
}
  0x14   : > { %s586_s6 = scalar_lea.vmem %s170_s21, 384  ;;  %p594_p1 = scmp.lt.s32.totalorder %s170_s21, %s170_s21 }
  0x15   : > { %p587_p12 = scmp.ne.s32.totalorder %s170_s21, %s586_s6  ;;  %p595_p4 = scmp.lt.s32.totalorder %s586_s6, %s586_s6 }
  0x17   : > { %p589_p13 = pnand %p587_p12, %p575_p7  ;;  %p596_p3 = por %p595_p4, %p594_p1 }
  0x19   : > { %p590_p0 = pneg %p589_p13 }
  0x1b   : > { %p597_p2 = pnand %p596_p3, %p590_p0 }
  0x1d   : > { %600 = shalt.err (!%p597_p2)
}
  0x1e   : > { %s614_s7 = smov 64   ;;  %s615_s8 = smov 4  }
  0x1f   : > { %544 = dma.hbm_to_vmem [thread:$0]  (!%p667_p5), %s730_s1, 384, %s170_s21, [#allocation3], %s614_s7, %s614_s7, %s615_s8  }
  0x20   : > { %p739_p6 = scmp.ne.s32.totalorder %s737_s22, 0 }
  0x21   : > { %p740_p8 = scmp.eq.s32.totalorder (!%p739_p6), %s654_s19, 0 }
  0x22   : > { %201 = sbr.rel (%p739_p6) target bundleno = 536 (0x218), region = 40 }
  0x29   : > { %606 = dma.done.wait (%p740_p8), [#allocation3], 384   ;;  %p741_p7 = pmov %p740_p8 }
  0x2a   : > { %p227_p2 = scmp.lt.s32.totalorder %s654_s19, 3  ;;  %v616_v0 = vmov 0.0   ;;  %vm617_vm0 = vmmov 0   ;;  %v560_v1 = vld [vmem:[#allocation2] sm:$0xff]   ;;  %v561_v2 = vld [vmem:[#allocation2 + $0x8] sm:$0xff]   ;;  %v562_v3 = vld [vmem:[#allocation2 + $0x10] sm:$0xff]  }
  0x2b   : > { %608 = vsyncadd (%p741_p7), [#allocation3], 4294966912  ;;  %515 = vmatprep.subr.bf16.mxu0 %v616_v0  ;;  %521 = vmatprep.mubr.msk.bf16.mxu0 %vm617_vm0, %v616_v0  ;;  %vm269_vm1 = vcmask 392192   ;;  %v563_v6 = vld [vmem:[%s732_s3] sm:$0xff]   ;;  %v564_v7 = vld [vmem:[%s732_s3 + $0x8] sm:$0xff]   ;;  %vm371_vm4 = vcmask 523264  }
  0x2c   : > { %525 = vmatprep.subr.bf16.mxu1 %v616_v0  ;;  %533 = vmatprep.mubr.msk.bf16.mxu1 %vm617_vm0, %v616_v0  ;;  %s743_s19 = smov (!%p227_p2, %s654_s19), 3  ;;  %v565_v8 = vld [vmem:[%s732_s3 + $0x10] sm:$0xff]   ;;  %v566_v9 = vld [vmem:[%s732_s3 + $0x18] sm:$0xff]   ;;  %v493_v10 = vld [vmem:[%s731_s2] ss:$0 sm:$0xff]  ;;  %vm417_vm5 = vcmask 162816  }
  0x2d   : > { %s491_s11 = sshll.u32 %s743_s19, 3  ;;  %516 = vmatpush3.bf16.msra.mxu0 %v560_v1  ;;  %526 = vmatpush3.bf16.msra.mxu1 %v563_v6  ;;  %v498_v32 = vld [vmem:[%s733_s4] ss:$0 sm:$0xff] }
  0x2e   : > { %517 = vmatprep.subr.bf16.mxu0 %v616_v0  ;;  %s230_s14 = scalar_lea.vmem %s729_s0, %s491_s11  ;;  %527 = vmatprep.subr.bf16.mxu1 %v616_v0  ;;  %s234_s6 = scalar_lea.vmem %s734_s5, %s491_s11 }
  0x2f   : > { %v236_v4 = vld [vmem:[%s230_s14] sm:$0xff] }
  0x30   : > { %v237_v5 = vpack.c.bf16 %v236_v4, %v236_v4 }
  0x31   : > { %518 = vmatpush3.bf16.msra.mxu0 %v561_v2  ;;  %528 = vmatpush3.bf16.msra.mxu1 %v564_v7 }
  0x32   : > { %519 = vmatprep.subr.bf16.mxu0 %v616_v0  ;;  %529 = vmatprep.subr.bf16.mxu1 %v616_v0 }
  0x35   : > { %520 = vmatpush3.bf16.msra.mxu0 %v562_v3  ;;  %530 = vmatpush3.bf16.msra.mxu1 %v565_v8 }
  0x36   : > { %531 = vmatprep.subr.bf16.mxu1 %v616_v0 }
  0x38   : > { %522 = vmatmul.mubr.msk.bf16.vlgmr.msra.gmra.mrb[0].mxu0 %vm269_vm1, %v237_v5 }
  0x39   : > { %532 = vmatpush3.bf16.msra.mxu1 %v566_v9 }
 0x10b   : > { %v307_v11 = vpop.f32.mrb[0].mxu0 }
 0x10c   : > { %v308_v12 = vadd.f32 %v493_v10, %v307_v11  ;;  %v523_v13 = vpop.f32.mrb[1].mxu0 }
 0x10d   : > { %v310_v14 = vpop.f32.mrb[2].mxu0 }
 0x10e   : > { %v316_v15 = vand.u32 2147483647, %v308_v12  ;;  %v524_v16 = vpop.f32.mrb[3].mxu0  ;;  %v313_v27 = vmax.f32 %v308_v12, 0.0  ;;  %vm314_vm3 = vcmp.ne.f32.partialorder %v308_v12, %v308_v12 }
 0x110   : > { %v317_v17 = vsub.f32 0.0, %v316_v15 }
 0x112   : > { %v318_v18 = vmul.f32 1.442695, %v317_v17 }
 0x114   : > { %567 = vpow2.f32 %v318_v18 }
 0x11e   : > { %v568_v19 = vpop.eup %567 }
 0x11f   : > { %v320_v20 = vadd.f32 1.0, %v568_v19  ;;  %v323_v21 = vmul.f32 -0.5, %v568_v19  ;;  %v326_v23 = vand.u32 2147483647, %v568_v19 }
 0x121   : > { %569 = vlog2.f32 %v320_v20  ;;  %v324_v22 = vadd.f32 1.0, %v323_v21  ;;  %vm327_vm2 = vcmp.lt.f32.partialorder %v326_v23, 0.0004427343 }
 0x123   : > { %v325_v26 = vmul.f32 %v568_v19, %v324_v22 }
 0x12b   : > { %v570_v24 = vpop.eup %569 }
 0x12c   : > { %v322_v25 = vmul.f32 0.6931472, %v570_v24 }
 0x12e   : > { %v328_v28 = vsel %vm327_vm2, %v325_v26, %v322_v25 }
 0x12f   : > { %v329_v29 = vadd.f32 %v328_v28, %v313_v27 }
 0x131   : > { %v330_v30 = vsel %vm314_vm3, %v308_v12, %v329_v29 }
 0x132   : > { %v331_v31 = vpack.c.bf16 %v330_v30, %v330_v30 }
 0x134   : > { %534 = vmatmul.mubr.msk.bf16.vlgmr.msra.gmra.mrb[0].mxu1 %vm371_vm4, %v331_v31 }
 0x207   : > { %v409_v33 = vpop.f32.mrb[0].mxu1 }
 0x208   : > { %v410_v34 = vadd.f32 %v498_v32, %v409_v33  ;;  %v535_v35 = vpop.f32.mrb[1].mxu1 }
 0x209   : > { %v412_v36 = vpop.f32.mrb[2].mxu1 }
 0x20a   : > { %v415_v37 = vmul.f32 1.442695, %v410_v34  ;;  %v536_v38 = vpop.f32.mrb[3].mxu1 }
 0x20c   : > { %571 = vpow2.f32 %v415_v37 }
 0x216   : > { %v572_v39 = vpop.eup %571 }
 0x217   : > { %418 = vst.msk [vmem:[%s234_s6] sm:$0xff] %vm417_vm5, %v572_v39 }
 0x218 PF: > { %s16_s18 = sadd.s32 1, %s611_s18  }
 0x219   : > { %p13_p3 = scmp.ge.s32.totalorder %s16_s18, 6  }
 0x21b   :  { %15 = sbr.rel (!%p13_p3) target bundleno = 1 (0x1), region = 75 }
 0x222   :  { %438 = vsyncpa [#allocation3], 1 }
 0x223   :  { %440 = vsyncpa [#allocation3 + $0x1], 1 }

</bundles_post_ra>
